<compile_context>
chip_gen: v7x
topology: tpu7x:2x2x1
jax: 0.10.0
libtpu: 0.0.40
codegen_flags: <defaults>
</compile_context>

<pallas_src>
import functools

import jax
import jax.numpy as jnp
from jax.experimental import pallas as pl
from jax.experimental.pallas import tpu as pltpu


def _residual_kernel(seed_ref, x_mm_ref, x_res_ref, w_ref, b_ref, o_ref, *,
                     dropout_p: float):
    # x_mm_ref : (tm, H)  f32   -- matmul operand (full hidden dim)
    # x_res_ref: (tm, tn) f32   -- residual slice matching the output tile
    # w_ref    : (H, tn)  bf16  -- weight column tile
    # b_ref    : (1, tn)  f32
    # o_ref    : (tm, tn)
    y = jnp.dot(x_mm_ref[...].astype(w_ref.dtype), w_ref[...],
                preferred_element_type=jnp.float32)
    y = y + b_ref[...].astype(jnp.float32)

    if dropout_p > 0.0:  # static Python branch -- dropout path only compiled when needed
        i = pl.program_id(0)
        j = pl.program_id(1)
        # TODO(synk): per-(i, j)-tile seeding makes the mask depend on the tiling;
        # use pltpu.sample_block for tiling-invariant dropout if reproducibility matters.
        pltpu.prng_seed(seed_ref[0] + i * pl.num_programs(1) + j)
        bits = pltpu.bitcast(pltpu.prng_random_bits(y.shape), jnp.uint32)
        # keep iff bits >= p * 2^32  (drop with probability p); single fused scale.
        thr = jnp.uint32(min(int(dropout_p * (1 << 32)), (1 << 32) - 1))
        scale = jnp.float32(1.0 / (1.0 - dropout_p))
        y = jnp.where(bits >= thr, y * scale, jnp.float32(0.0))

    o_ref[...] = (y + x_res_ref[...].astype(jnp.float32)).astype(o_ref.dtype)


def _pick_tile(dim, prefs):
    for p in prefs:
        if dim % p == 0:
            return p
    return dim


def residual_forward(x, w, b, *, dropout_p: float = 0.0, seed: int = 0,
                     tm: int | None = None, tn: int | None = None):
    """x: [B, S, H] float32; w: [H, H]; b: [H]. Returns [B, S, H]."""
    assert 0.0 <= dropout_p < 1.0, "dropout_p must be in [0, 1)"
    B, S, H = x.shape
    M = B * S

    # Row tile: as large as possible (multiple of 8, up to 256) to fill the MXU
    # and amortize the ~0.35 us/step grid overhead.
    if tm is None:
        tm = _pick_tile(M, (256, 128, 64, 32, 16, 8))
    # Column tile: multiple of 128 (lane-dense stores) bounding the resident W slab;
    # falls back to full H for lane-sparse demo sizes.
    if tn is None:
        tn = _pick_tile(H, (512, 256, 128)) if H % 128 == 0 else H
    assert M % tm == 0 and H % tn == 0

    # Keep at least 2 grid programs when possible so both v7x TensorCores get work.
    if (M // tm) * (H // tn) < 2 and tm > 8 and M % (tm // 2) == 0:
        tm //= 2

    x2 = x.reshape(M, H)
    b2 = b.reshape(1, H).astype(jnp.float32)
    w_bf = w.astype(jnp.bfloat16)  # native MXU input dtype; halves W bytes
    seed_arr = jnp.array([seed], dtype=jnp.int32)

    kernel = functools.partial(_residual_kernel, dropout_p=float(dropout_p))
    grid = (M // tm, H // tn)

    # VMEM budget for the chosen tiles (double-buffered), with headroom; clamp to
    # <= 64 MiB so it fits physical VMEM on v7x as well as v5e/v6e.
    vmem_bytes = (2 * tm * H * 4      # x matmul tile (f32)
                  + 2 * tm * tn * 4   # x residual tile (f32)
                  + 2 * H * tn * 2    # W tile (bf16)
                  + 2 * tn * 4        # bias tile
                  + 2 * tm * tn * 4)  # output tile
    vmem_limit = int(min(max(2 * vmem_bytes, 32 * 1024 * 1024), 64 * 1024 * 1024))

    cost = pl.CostEstimate(
        flops=2 * M * H * H,
        transcendentals=0,
        bytes_accessed=2 * M * H * 4 + H * H * 2 + H * 4 + M * H * x.dtype.itemsize,
    )

    out = pl.pallas_call(
        kernel,
        out_shape=jax.ShapeDtypeStruct((M, H), x.dtype),
        grid_spec=pltpu.PrefetchScalarGridSpec(
            num_scalar_prefetch=1,                                  # seed -> SMEM
            grid=grid,
            in_specs=[
                pl.BlockSpec((tm, H), lambda i, j, seed: (i, 0)),   # x (matmul operand)
                pl.BlockSpec((tm, tn), lambda i, j, seed: (i, j)),  # x (residual slice)
                pl.BlockSpec((H, tn), lambda i, j, seed: (0, j)),   # W column tile (bf16)
                pl.BlockSpec((1, tn), lambda i, j, seed: (0, j)),   # bias tile
            ],
            out_specs=pl.BlockSpec((tm, tn), lambda i, j, seed: (i, j)),
        ),
        compiler_params=pltpu.CompilerParams(
            dimension_semantics=("parallel", "parallel"),
            vmem_limit_bytes=vmem_limit,
        ),
        cost_estimate=cost,
    )(seed_arr, x2, x2, w_bf, b2)

    return out.reshape(B, S, H)


def residual_reference(x, w, b):
    # Same math as the kernel (bf16 matmul operands, f32 accumulation), dropout_p = 0
    # (PyTorch Residual default -> identity dropout).
    y = jnp.dot(x.astype(jnp.bfloat16), w.astype(jnp.bfloat16),
                preferred_element_type=jnp.float32)
    return y + b + x


if __name__ == "__main__":
    B, S, H = 2, 8, 128  # small but lane-dense hidden size (multiple of 128)
    key = jax.random.PRNGKey(0)
    kx, kw, kb = jax.random.split(key, 3)

    x = jax.random.normal(kx, (B, S, H), dtype=jnp.float32)
    # deterministic "inner module" params (Linear H->H)
    w = jax.random.normal(kw, (H, H), dtype=jnp.float32) * (1.0 / jnp.sqrt(H))
    b = jax.random.normal(kb, (H,), dtype=jnp.float32) * 0.01

    out = residual_forward(x, w, b, dropout_p=0.0)
    out = jax.block_until_ready(out)

    ref = residual_reference(x, w, b)
    assert out.shape == (B, S, H)
    assert jnp.allclose(out, ref, atol=2e-2, rtol=2e-2), "mismatch vs reference"

    print("KERNEL_OK")
</pallas_src>

<mosaic_0001>
module attributes {stable_mosaic.version = 11 : i64} {
  func.func @_residual_kernel(%arg0: i32, %arg1: i32, %arg2: memref<1xi32, #tpu.memory_space<smem>>, %arg3: memref<8x128xf32, #tpu.memory_space<vmem>>, %arg4: memref<8x128xf32, #tpu.memory_space<vmem>>, %arg5: memref<128x128xbf16, #tpu.memory_space<vmem>>, %arg6: memref<1x128xf32, #tpu.memory_space<vmem>>, %arg7: memref<8x128xf32, #tpu.memory_space<vmem>>) attributes {dimension_semantics = [#tpu.dimension_semantics<parallel>, #tpu.dimension_semantics<parallel>], iteration_bounds = array<i64: 2, 1>, scalar_prefetch = 1 : i64, scratch_operands = 0 : i64, tpu.core_type = #tpu.core_type<tc>, window_params = [{transform_indices = @transform_0, window_bounds = array<i64: 8, 128>}, {transform_indices = @transform_1, window_bounds = array<i64: 8, 128>}, {transform_indices = @transform_2, window_bounds = array<i64: 128, 128>}, {transform_indices = @transform_3, window_bounds = array<i64: 1, 128>}, {transform_indices = @transform_4, window_bounds = array<i64: 8, 128>}]} {
    %c0 = arith.constant 0 : index
    %c0_0 = arith.constant 0 : index
    %0 = vector.load %arg3[%c0, %c0_0] : memref<8x128xf32, #tpu.memory_space<vmem>>, vector<8x128xf32>
    %1 = arith.truncf %0 : vector<8x128xf32> to vector<8x128xbf16>
    %c0_1 = arith.constant 0 : index
    %c0_2 = arith.constant 0 : index
    %2 = vector.load %arg5[%c0_1, %c0_2] : memref<128x128xbf16, #tpu.memory_space<vmem>>, vector<128x128xbf16>
    %cst = arith.constant dense<0.000000e+00> : vector<8x128xf32>
    %3 = tpu.matmul %1, %2, %cst {dimension_numbers = #tpu.dot_dimension_numbers<[1], [0], [0], [1], [0, 0, 1, 1], [], []>} : vector<8x128xbf16>, vector<128x128xbf16>, vector<8x128xf32> -> vector<8x128xf32>
    %c0_3 = arith.constant 0 : index
    %c0_4 = arith.constant 0 : index
    %4 = vector.load %arg6[%c0_3, %c0_4] : memref<1x128xf32, #tpu.memory_space<vmem>>, vector<1x128xf32>
    %5 = vector.broadcast %4 : vector<1x128xf32> to vector<8x128xf32>
    %6 = arith.addf %3, %5 : vector<8x128xf32>
    %c0_5 = arith.constant 0 : index
    %c0_6 = arith.constant 0 : index
    %7 = vector.load %arg4[%c0_5, %c0_6] : memref<8x128xf32, #tpu.memory_space<vmem>>, vector<8x128xf32>
    %8 = arith.addf %6, %7 : vector<8x128xf32>
    %c0_7 = arith.constant 0 : index
    %c0_8 = arith.constant 0 : index
    %9 = vector.load %arg7[%c0_7, %c0_8] : memref<8x128xf32, #tpu.memory_space<vmem>>, vector<8x128xf32>
    tpu.vector_store %arg7[%c0_7, %c0_8], %8 {strides = array<i32>} : memref<8x128xf32, #tpu.memory_space<vmem>>, vector<8x128xf32>,
    return
  }
  func.func @transform_0(%arg0: i32, %arg1: i32, %arg2: memref<1xi32, #tpu.memory_space<smem>>) -> (i32, i32) {
    %c0_i32 = arith.constant 0 : i32
    %c0_i32_0 = arith.constant 0 : i32
    return %arg0, %c0_i32 : i32, i32
  }
  func.func @transform_1(%arg0: i32, %arg1: i32, %arg2: memref<1xi32, #tpu.memory_space<smem>>) -> (i32, i32) {
    %c0_i32 = arith.constant 0 : i32
    return %arg0, %arg1 : i32, i32
  }
  func.func @transform_2(%arg0: i32, %arg1: i32, %arg2: memref<1xi32, #tpu.memory_space<smem>>) -> (i32, i32) {
    %c0_i32 = arith.constant 0 : i32
    %c0_i32_0 = arith.constant 0 : i32
    return %c0_i32, %arg1 : i32, i32
  }
  func.func @transform_3(%arg0: i32, %arg1: i32, %arg2: memref<1xi32, #tpu.memory_space<smem>>) -> (i32, i32) {
    %c0_i32 = arith.constant 0 : i32
    %c0_i32_0 = arith.constant 0 : i32
    return %c0_i32, %arg1 : i32, i32
  }
  func.func @transform_4(%arg0: i32, %arg1: i32, %arg2: memref<1xi32, #tpu.memory_space<smem>>) -> (i32, i32) {
    %c0_i32 = arith.constant 0 : i32
    return %arg0, %arg1 : i32, i32
  }
}

</mosaic_0001>

<bundles_post_ra>
// kernel: tpu_custom_call.1
= control target key start
LH: loop header
LB: loop body
LE: loop exit
PB: predicated region body
PF: predicated region fallthrough
CT: control target
= control target key end

     0   :  { %s1185_s0 = inlined_call_operand.<no memory space> [shape: s32[1], index: 0, kind: input, shape index: {}]   ;;  %s1186_s1 = inlined_call_operand.hbm [shape: f32[16,128], index: 1, kind: input, shape index: {}]   ;;  %s1187_s2 = inlined_call_operand.hbm [shape: f32[16,128], index: 2, kind: input, shape index: {}]   ;;  %s1188_s3 = inlined_call_operand.hbm [shape: bf16[128,128], index: 3, kind: input, shape index: {}]   ;;  %s1189_s4 = inlined_call_operand.vmem [shape: f32[1,128], index: 4, kind: input, shape index: {}]   ;;  %s1190_s5 = inlined_call_operand.hbm [shape: f32[16,128], index: 5, kind: output, shape index: {}]  }
   0x1   :  { %1197 = sst [smem:[#allocation17_spill]] %s1188_s3 }
   0x2   :  { %11 = vsyncpa [#allocation5], 0 }
   0x3   :  { %13 = vsyncpa [#allocation5 + $0x1], 0 }
   0x4   :  { %14 = vsyncpa [#allocation8], 0 }
   0x5   :  { %16 = vsyncpa [#allocation8 + $0x1], 0 }
   0x6   :  { %17 = vsyncpa [#allocation6], 0 }
   0x7   :  { %19 = vsyncpa [#allocation6 + $0x1], 0  ;;  %s927_s0 = smov 0   ;;  %s929_s18 = smov 0  }
   0x8   :  { %s931_s19 = smov 0   ;;  %s933_s20 = smov 0  }
   0x9   :  { %s935_s21 = smov 0   ;;  %s937_s22 = smov 0  }
   0xa LB: > { %1198 = sst [smem:[#allocation15_spill]] %s883_s21  ;;  %s958_s23 = sadd.s32 4294967295, %s887_s22   ;;  %s887_s22 = sphi %s937_s22, %s25_s22   ;;  %s883_s21 = sphi %s935_s21, %s1217_s21   ;;  %s879_s20 = sphi %s933_s20, %s1216_s20   ;;  %s875_s19 = sphi %s931_s19, %s1220_s19   ;;  %s871_s18 = sphi %s929_s18, %s1219_s18   ;;  %s867_s0 = sphi %s927_s0, %s1218_s0  }
   0xb   : > { %s563_s24 = sadd.s32 4294967294, %s887_s22   ;;  %p57_p0 = scmp.ne.s32.totalorder %s871_s18, %s867_s0 }
   0xc   : > { %p1191_p1 = scmp.eq.s32.totalorder %s958_s23, 0  ;;  %p169_p3 = scmp.eq.s32.totalorder %s563_s24, 1 }
   0xd   : > { %p564_p5 = scmp.ge.s32.totalorder %s887_s22, 1  ;;  %p176_p7 = scmp.lt.s32.totalorder %s887_s22, 3 }
   0xe   : > { %p967_p4 = por %p1191_p1, %p57_p0  ;;  %p972_p6 = por %p169_p3, %p57_p0 }
   0xf   : > { %p977_p8 = pnand %p564_p5, %p176_p7  ;;  %s889_s28 = smov [#allocation9]  }
  0x10   : > { %s1199_s25 = scalar_select %p967_p4, 1, 0 }
  0x11   : > { %s1200_s26 = scalar_select %p972_p6, 1, 0 }
  0x12   : > { %s1201_s27 = scalar_select %p977_p8, 1, 0 }
  0x13   : > { %s190_s29 = sshll.u32 %s889_s28, 4  ;;  %p629_p9 = pneg %p977_p8  ;;  %s191_s29 = int_to_ptr.vmem [resolvable:$true] %s190_s29 }
  0x14   : > { %s37_s6 = sadd.s32 1, %s883_s21  ;;  %s1203_s3 = sld [smem:[#allocation17_spill]] }
  0x15   : > { %p986_p11 = pnand %p629_p9, %p1191_p1 }
  0x17   : > { %p711_p13 = pneg %p986_p11 }
  0x1a   : > { %s709_s9 = scalar_lea.hbm %s1203_s3, 1024 }
  0x1b   : > { %p710_p12 = scmp.ne.s32.totalorder %s1203_s3, %s709_s9  ;;  %p716_p5 = scmp.lt.u32.totalorder %s709_s9, %s1203_s3 }
  0x1d   : > { %p712_p0 = pnand %p711_p13, %p710_p12 }
  0x1f   : > { %p713_p3 = pneg %p712_p0 }
  0x21   : > { %p718_p7 = pnand %p716_p5, %p713_p3 }
  0x23   : > { %721 = shalt.err (!%p718_p7)
}
  0x24   : > { %s722_s14 = scalar_lea.vmem %s191_s29, 1024  ;;  %p730_p2 = scmp.lt.s32.totalorder %s191_s29, %s191_s29 }
  0x25   : > { %p723_p9 = scmp.ne.s32.totalorder %s191_s29, %s722_s14  ;;  %p731_p6 = scmp.lt.s32.totalorder %s722_s14, %s722_s14 }
  0x27   : > { %p725_p10 = pnand %p723_p9, %p711_p13  ;;  %p732_p4 = por %p731_p6, %p730_p2 }
  0x29   : > { %p726_p1 = pneg %p725_p10 }
  0x2b   : > { %p733_p8 = pnand %p732_p4, %p726_p1 }
  0x2d   : > { %736 = shalt.err (!%p733_p8)
}
  0x2e   : > { %s890_s15 = smov 64   ;;  %s891_s16 = smov 4  }
  0x2f   : > { %632 = dma.hbm_to_vmem [thread:$0]  (!%p986_p11), %s1203_s3, 1024, %s191_s29, [#allocation8], %s890_s15, %s890_s15, %s891_s16  }
  0x30   : > { %p39_p1 = scmp.ge.s32.totalorder %s37_s6, 2  ;;  %s44_s28 = sadd.s32 1, %s875_s19 }
  0x31   : > { %p51_p2 = scmp.ne.s32.totalorder %s875_s19, %s871_s18  ;;  %p52_p4 = scmp.eq.s32.totalorder %s887_s22, 0 }
  0x32   : > { %s1222_s6 = smov (%p39_p1, %s37_s6), 0  ;;  %p1206_p8 = scmp.eq.s32.totalorder %s958_s23, 1 }
  0x33   : > { %1204 = sst [smem:[#allocation16_spill]] %s1222_s6  ;;  %p1013_p6 = por %p52_p4, %p51_p2 }
  0x34   : > { %p1019_p10 = por %p1206_p8, %p51_p2  ;;  %s41_s8 = ssub.s32 %s883_s21, %s1222_s6 }
  0x35   : > { %p645_p11 = scmp.lt.s32.totalorder %s887_s22, 2  ;;  %p42_p12 = scmp.eq.s32.totalorder %s41_s8, 0 }
  0x36   : > { %s1207_s30 = scalar_select %p1019_p10, 1, 0 }
  0x37   : > { %s210_s29 = sand.u32 1, %s875_s19   ;;  %s569_s11 = sshll.u32 %s883_s21, 7 }
  0x38   : > { %s1027_s9 = sshll.u32 %s210_s29, 3  ;;  %s1036_s14 = scalar_lea.hbm %s1186_s1, %s569_s11 }
  0x39   : > { %s1030_s10 = scalar_select %p42_p12, %s875_s19, %s44_s28  }
  0x3a   : > { %s214_s15 = scalar_lea.vmem [#allocation4], %s1027_s9  ;;  %p1043_p13 = pnand %p645_p11, %p1013_p6 }
  0x3b   : > { %s221_s16 = sshll.u32 %s214_s15, 4  ;;  %s1050_s8 = scalar_lea.hbm %s1187_s2, %s569_s11  ;;  %s1039_s16 = int_to_ptr.vmem [resolvable:$true] %s221_s16 }
  0x3c   : > { %s228_s12 = sand.u32 1, %s887_s22   ;;  %s211_s13 = scalar_lea.sflag [#allocation5], %s210_s29 }
  0x3d   : > { %s737_s3 = scalar_lea.hbm %s1036_s14, 128  ;;  %p739_p3 = pneg %p1043_p13 }
  0x3e   : > { %p738_p0 = scmp.ne.s32.totalorder %s1036_s14, %s737_s3  ;;  %s742_s6 = scalar_lea.hbm %s1186_s1, 256 }
  0x3f   : > { %p743_p9 = scmp.lt.u32.totalorder %s1036_s14, %s1186_s1  ;;  %p744_p1 = scmp.lt.u32.totalorder %s742_s6, %s737_s3 }
  0x40   : > { %p740_p5 = pnand %p739_p3, %p738_p0  ;;  %p746_p4 = scmp.lt.u32.totalorder %s737_s3, %s1036_s14 }
  0x41   : > { %p745_p2 = por %p744_p1, %p743_p9 }
  0x42   : > { %p741_p7 = pneg %p740_p5 }
  0x43   : > { %p747_p6 = por %p746_p4, %p745_p2 }
  0x45   : > { %p748_p8 = pnand %p747_p6, %p741_p7 }
  0x47   : > { %751 = shalt.err (!%p748_p8)
}
  0x48   : > { %s752_s29 = scalar_lea.vmem %s1039_s16, 128  ;;  %s892_s11 = smov [#allocation4]  }
  0x49   : > { %p753_p11 = scmp.ne.s32.totalorder %s1039_s16, %s752_s29  ;;  %s757_s28 = sshll.u32 %s892_s11, 4  ;;  %s758_s28 = int_to_ptr.vmem [resolvable:$false] %s757_s28 }
  0x4a   : > { %s759_s21 = scalar_lea.vmem %s758_s28, 256  ;;  %p760_p5 = scmp.lt.s32.totalorder %s1039_s16, %s758_s28 }
  0x4b   : > { %p755_p12 = pnand %p753_p11, %p739_p3  ;;  %p761_p9 = scmp.lt.s32.totalorder %s759_s21, %s752_s29 }
  0x4d   : > { %p756_p0 = pneg %p755_p12  ;;  %p762_p1 = por %p761_p9, %p760_p5 }
  0x4f   : > { %p763_p2 = pnand %p762_p1, %p756_p0 }
  0x51   : > { %766 = shalt.err (!%p763_p2)
}
  0x52   : > { %636 = dma.hbm_to_vmem [thread:$0]  (!%p1043_p13), %s1036_s14, 128, %s1039_s16, %s211_s13  }
  0x53   : > { %s232_s3 = scalar_lea.vmem [#allocation7], %s1027_s9  ;;  %s229_s7 = scalar_lea.sflag [#allocation8], %s228_s12 }
  0x54   : > { %s240_s6 = sshll.u32 %s232_s3, 4  ;;  %s767_s15 = scalar_lea.hbm %s1050_s8, 128  ;;  %s241_s6 = int_to_ptr.vmem [resolvable:$true] %s240_s6 }
  0x55   : > { %p768_p7 = scmp.ne.s32.totalorder %s1050_s8, %s767_s15  ;;  %s772_s11 = scalar_lea.hbm %s1187_s2, 256 }
  0x56   : > { %p773_p8 = scmp.lt.u32.totalorder %s1050_s8, %s1187_s2  ;;  %p774_p11 = scmp.lt.u32.totalorder %s772_s11, %s767_s15 }
  0x57   : > { %p770_p4 = pnand %p768_p7, %p739_p3  ;;  %p776_p0 = scmp.lt.u32.totalorder %s767_s15, %s1050_s8 }
  0x58   : > { %p775_p12 = por %p774_p11, %p773_p8 }
  0x59   : > { %p771_p6 = pneg %p770_p4 }
  0x5a   : > { %p777_p5 = por %p776_p0, %p775_p12 }
  0x5c   : > { %p778_p9 = pnand %p777_p5, %p771_p6 }
  0x5e   : > { %781 = shalt.err (!%p778_p9)
}
  0x5f   : > { %s782_s9 = scalar_lea.vmem %s241_s6, 128  ;;  %s893_s14 = smov [#allocation7]  }
  0x60   : > { %p783_p1 = scmp.ne.s32.totalorder %s241_s6, %s782_s9  ;;  %s787_s16 = sshll.u32 %s893_s14, 4  ;;  %s788_s16 = int_to_ptr.vmem [resolvable:$false] %s787_s16 }
  0x61   : > { %s789_s12 = scalar_lea.vmem %s788_s16, 256  ;;  %p790_p4 = scmp.lt.s32.totalorder %s241_s6, %s788_s16 }
  0x62   : > { %p785_p2 = pnand %p783_p1, %p739_p3  ;;  %p791_p10 = scmp.lt.s32.totalorder %s789_s12, %s782_s9 }
  0x64   : > { %p786_p7 = pneg %p785_p2  ;;  %p792_p8 = por %p791_p10, %p790_p4 }
  0x66   : > { %p793_p11 = pnand %p792_p8, %p786_p7 }
  0x68   : > { %796 = shalt.err (!%p793_p11)
}
  0x69   : > { %639 = dma.hbm_to_vmem [thread:$0]  (!%p1043_p13), %s1050_s8, 128, %s241_s6, %s229_s7  }
  0x6a   : > { %p1209_p6 = scmp.ne.s32.totalorder %s1201_s27, 0 }
  0x6b   : > { %s1103_s13 = sand.u32 (!%p1209_p6), 1, %s871_s18   ;;  %p1210_p10 = scmp.ne.s32.totalorder (!%p1209_p6), %s1199_s25, 0 }
  0x6c   : > { %249 = sbr.rel (%p1209_p6) target bundleno = 385 (0x181), region = 36  ;;  %s1106_s3 = sshll.u32 (!%p1209_p6), %s1103_s13, 3 }
  0x6d   : > { %s252_s15 = scalar_lea.sflag (!%p1209_p6), [#allocation5], %s1103_s13  ;;  %s255_s24 = scalar_lea.vmem (!%p1209_p6), [#allocation4], %s1106_s3 }
  0x73   : > { %850 = dma.done.wait (%p1210_p10), %s252_s15, 128  }
  0x74   : > { %852 = vsyncadd (%p1210_p10), %s252_s15, 4294967168  ;;  %s260_s27 = sand.u32 1, %s958_s23   ;;  %s264_s8 = scalar_lea.vmem [#allocation7], %s1106_s3 }
  0x75   : > { %s261_s17 = scalar_lea.sflag [#allocation8], %s260_s27 }
  0x76   : > { %854 = dma.done.wait (%p1210_p10), %s261_s17, 128  }
  0x77   : > { %856 = vsyncadd (%p1210_p10), %s261_s17, 4294967168  ;;  %p1211_p13 = scmp.eq.s32.totalorder %s958_s23, 0 }
  0x79   : > { %858 = dma.done.wait (%p1211_p13), [#allocation8], 1024   ;;  %p1212_p3 = pmov %p1211_p13 }
  0x7a   : > { %v894_v0 = vmov 0.0   ;;  %vm895_vm0 = vmmov 0   ;;  %v701_v1 = vld [vmem:[#allocation9] sm:$0xff]   ;;  %v702_v2 = vld [vmem:[#allocation9 + $0x8] sm:$0xff]   ;;  %v703_v3 = vld [vmem:[#allocation9 + $0x10] sm:$0xff]   ;;  %s587_s6 = sshll.u32 %s879_s20, 7 }
  0x7b   : > { %860 = vsyncadd (%p1212_p3), [#allocation8], 4294966272  ;;  %599 = vmatprep.subr.bf16.mxu0 %v894_v0  ;;  %615 = vmatprep.mubr.msk.bf16.mxu0 %vm895_vm0, %v894_v0  ;;  %v704_v4 = vld [vmem:[#allocation9 + $0x18] sm:$0xff]   ;;  %v705_v5 = vld [vmem:[#allocation9 + $0x20] sm:$0xff]   ;;  %s300_s7 = scalar_lea.vmem [#allocation10], %s1106_s3  ;;  %s1136_s21 = scalar_lea.hbm %s1190_s5, %s587_s6 }
  0x7c   : > { %600 = vmatpush3.bf16.msra.mxu0 %v701_v1  ;;  %v706_v6 = vld [vmem:[#allocation9 + $0x28] sm:$0xff]   ;;  %v707_v7 = vld [vmem:[#allocation9 + $0x30] sm:$0xff]   ;;  %v708_v8 = vld [vmem:[#allocation9 + $0x38] sm:$0xff]   ;;  %s436_s29 = sshll.u32 %s300_s7, 4  ;;  %s422_s9 = scalar_lea.sflag [#allocation6], %s1103_s13  ;;  %s1138_s29 = int_to_ptr.vmem [resolvable:$true] %s436_s29 }
  0x7d   : > { %601 = vmatprep.subr.bf16.mxu0 %v894_v0  ;;  %v305_v9 = vld [vmem:[%s255_s24] sm:$0xff]  ;;  %v418_v13 = vld [vmem:[%s264_s8] sm:$0xff]  ;;  %s797_s20 = scalar_lea.vmem %s1138_s29, 128  ;;  %p1213_p0 = scmp.ne.s32.totalorder %s1207_s30, 0 }
  0x7e   : > { %v306_v10 = vpack.c.bf16 %v305_v9, %v305_v9  ;;  %v577_v11 = vld [vmem:[%s1189_s4] ss:$0 sm:$0xff]  ;;  %p798_p12 = scmp.ne.s32.totalorder %s1138_s29, %s797_s20  ;;  %s896_s14 = smov [#allocation10]  }
  0x7f   : > { %s801_s16 = sshll.u32 %s896_s14, 4  ;;  %s802_s16 = int_to_ptr.vmem [resolvable:$false] %s801_s16 }
  0x80   : > { %602 = vmatpush3.bf16.msra.mxu0 %v702_v2  ;;  %p799_p5 = pnand %p798_p12, %p1213_p0  ;;  %s803_s12 = scalar_lea.vmem %s802_s16, 256 }
  0x81   : > { %603 = vmatprep.subr.bf16.mxu0 %v894_v0  ;;  %p804_p1 = scmp.lt.s32.totalorder %s1138_s29, %s802_s16  ;;  %p805_p2 = scmp.lt.s32.totalorder %s803_s12, %s797_s20 }
  0x82   : > { %p800_p9 = pneg %p799_p5 }
  0x83   : > { %p806_p7 = por %p805_p2, %p804_p1 }
  0x84   : > { %604 = vmatpush3.bf16.msra.mxu0 %v703_v3 }
  0x85   : > { %605 = vmatprep.subr.bf16.mxu0 %v894_v0  ;;  %p807_p4 = pnand %p806_p7, %p800_p9 }
  0x88   : > { %606 = vmatpush3.bf16.msra.mxu0 %v704_v4 }
  0x89   : > { %607 = vmatprep.subr.bf16.mxu0 %v894_v0 }
  0x8c   : > { %608 = vmatpush3.bf16.msra.mxu0 %v705_v5 }
  0x8d   : > { %609 = vmatprep.subr.bf16.mxu0 %v894_v0 }
  0x90   : > { %610 = vmatpush3.bf16.msra.mxu0 %v706_v6 }
  0x91   : > { %611 = vmatprep.subr.bf16.mxu0 %v894_v0 }
  0x94   : > { %612 = vmatpush3.bf16.msra.mxu0 %v707_v7 }
  0x95   : > { %613 = vmatprep.subr.bf16.mxu0 %v894_v0 }
  0x98   : > { %614 = vmatpush3.bf16.msra.mxu0 %v708_v8 }
  0x9b   : > { %616 = vmatmul.mubr.bf16.vlgmr.msra.gmra.mrb[0].mxu0 %v306_v10 }
 0x16e   : > { %v412_v12 = vpop.f32.mrb[0].mxu0 }
 0x16f   : > { %v413_v14 = vadd.f32 %v577_v11, %v412_v12  ;;  %v617_v15 = vpop.f32.mrb[1].mxu0 }
 0x170   : > { %v415_v16 = vpop.f32.mrb[2].mxu0 }
 0x171   : > { %v419_v17 = vadd.f32 %v418_v13, %v413_v14  ;;  %v618_v18 = vpop.f32.mrb[3].mxu0 }
 0x173   : > { %420 = vst [vmem:[%s300_s7] sm:$0xff] %v419_v17 }
 0x174   : > { %810 = shalt.err (!%p807_p4)
}
 0x175   : > { %s811_s13 = scalar_lea.hbm %s1136_s21, 128  ;;  %s815_s24 = scalar_lea.hbm %s1190_s5, 256 }
 0x176   : > { %p812_p8 = scmp.ne.s32.totalorder %s1136_s21, %s811_s13  ;;  %p816_p10 = scmp.lt.u32.totalorder %s1136_s21, %s1190_s5 }
 0x177   : > { %p817_p13 = scmp.lt.u32.totalorder %s815_s24, %s811_s13  ;;  %p819_p12 = scmp.lt.u32.totalorder %s811_s13, %s1136_s21 }
 0x178   : > { %p813_p11 = pnand %p812_p8, %p1213_p0 }
 0x179   : > { %p818_p3 = por %p817_p13, %p816_p10 }
 0x17a   : > { %p814_p6 = pneg %p813_p11 }
 0x17b   : > { %p820_p5 = por %p819_p12, %p818_p3 }
 0x17d   : > { %p821_p9 = pnand %p820_p5, %p814_p6 }
 0x17f   : > { %824 = shalt.err (!%p821_p9)
}
 0x180   : > { %627 = dma.vmem_to_hbm [thread:$0]  (%p1213_p0), %s1138_s29, 128, %s1136_s21, %s422_s9  }
 0x181 PF: > { %s448_s8 = sand.u32 1, %s867_s0   ;;  %p1214_p1 = scmp.ne.s32.totalorder %s1200_s26, 0 }
 0x182   : > { %p1215_p2 = scmp.ge.s32.totalorder %s887_s22, 2  ;;  %s449_s23 = scalar_lea.sflag [#allocation6], %s448_s8 }
 0x184   : > { %p641_p7 = pnand %p1215_p2, %p1214_p1 }
 0x186   : > { %862 = dma.done.wait (!%p641_p7), %s449_s23, 128  }
 0x187   : > { %864 = vsyncadd (!%p641_p7), %s449_s23, 4294967168  ;;  %s25_s22 = sadd.s32 1, %s887_s22   ;;  %s1216_s20 = sld [smem:[#allocation15_spill]] }
 0x188   : > { %p22_p4 = scmp.ge.s32.totalorder %s25_s22, 4   ;;  %s1217_s21 = sld [smem:[#allocation16_spill]] }
 0x189   : > { %s1218_s0 = smov %s871_s18  ;;  %s1219_s18 = smov %s875_s19 }
 0x18a   : > { %s1220_s19 = smov %s1030_s10  ;;  %24 = sbr.rel (!%p22_p4) target bundleno = 10 (0xa), region = 102 }
 0x191   :  { %454 = vsyncpa [#allocation5], 1 }
 0x192   :  { %456 = vsyncpa [#allocation5 + $0x1], 1 }
 0x193   :  { %457 = vsyncpa [#allocation8], 1 }
 0x194   :  { %459 = vsyncpa [#allocation8 + $0x1], 1 }
 0x195   :  { %460 = vsyncpa [#allocation6], 1 }
 0x196   :  { %462 = vsyncpa [#allocation6 + $0x1], 1 }

</bundles_post_ra>
